<compile_context>
chip_gen: v7x
topology: tpu7x:2x2x1
jax: 0.10.0
libtpu: 0.0.40
codegen_flags: <defaults>
</compile_context>

<pallas_src>
import jax
import jax.numpy as jnp
from jax.experimental import pallas as pl
from jax.experimental.pallas import tpu as pltpu

# Packed-parameter slab layout (f32, shape (40, 17)):
#   rows  0:16, cols 0:10 -> W1 (16, 10)  (cols 10:16 stay zero)  col 16 -> b1
#   rows 16:32, cols 0:16 -> W2 (16, 16)                          col 16 -> b2
#   rows 32:33, cols 0:16 -> W3 ( 1, 16)                          col 16 -> b3
SLAB_ROWS, SLAB_COLS, BIAS_COL = 40, 17, 16
F_IN, F_PAD = 10, 16       # input features, padded to an 8-aligned contraction dim
TB_CAP = 1024              # (16, 1024) f32 input tile is only ~64 KiB


def mlp_kernel(x_ref, p_ref, o_ref):
    # x_ref: (16, TB) features (zero-padded 10->16) on sublanes, batch on lanes
    # p_ref: (40, 17) packed weights + biases (VMEM-resident across grid steps)
    # o_ref: (1,  TB) lane-dense output row
    x = x_ref[...]
    p = p_ref[...]

    w1, b1 = p[0:16, 0:16], p[0:16, BIAS_COL:BIAS_COL + 1]   # W1 cols 10:16 are zero
    w2, b2 = p[16:32, 0:16], p[16:32, BIAS_COL:BIAS_COL + 1]
    w3, b3 = p[32:33, 0:16], p[32:33, BIAS_COL:BIAS_COL + 1]

    # One MXU matmul per layer; f32 operands keep the 1e-5 reference tolerance.
    h1 = jnp.maximum(jnp.dot(w1, x, preferred_element_type=jnp.float32) + b1, 0.0)   # (16, TB)
    h2 = jnp.maximum(jnp.dot(w2, h1, preferred_element_type=jnp.float32) + b2, 0.0)  # (16, TB)
    z = jnp.dot(w3, h2, preferred_element_type=jnp.float32) + b3                     # (1,  TB)

    # sigmoid(z) = 1 / (1 + exp(-z)): exp + reciprocal seed on the EUP slot,
    # plus one Newton step (3 cheap VALU ops on a (1, TB) row) to recover full
    # f32 accuracy so the approx reciprocal stays within the 1e-5 check.
    den = 1.0 + jnp.exp(-z)
    inv = pl.reciprocal(den, approx=True)
    inv = inv * (2.0 - den * inv)
    o_ref[...] = inv.astype(o_ref.dtype)


def pack_params(params):
    """Pack PyTorch-layout params (W:(out,in), b:(out,)) into one f32 slab.

    Call once per parameter update, NOT per forward call."""
    w1, b1, w2, b2, w3, b3 = params
    slab = jnp.zeros((SLAB_ROWS, SLAB_COLS), jnp.float32)
    slab = slab.at[0:16, 0:10].set(w1).at[0:16, BIAS_COL:BIAS_COL + 1].set(b1[:, None])
    slab = slab.at[16:32, 0:16].set(w2).at[16:32, BIAS_COL:BIAS_COL + 1].set(b2[:, None])
    slab = slab.at[32:33, 0:16].set(w3).at[32:33, BIAS_COL:BIAS_COL + 1].set(b3[:, None])
    return slab


def _choose_tile(batch):
    """Lane-aligned batch tile; >= 2 grid steps when batch allows (v7x 2-TC split)."""
    b_aligned = ((batch + 127) // 128) * 128
    if b_aligned >= 256:
        half = ((b_aligned // 2 + 127) // 128) * 128
        tb = min(TB_CAP, half)
    else:
        tb = 128
    bp = ((batch + tb - 1) // tb) * tb
    return tb, bp


@jax.jit
def sequential_nn_forward(x, slab):
    """x: (B, 10) f32 -> (B, 1) f32, same math as the PyTorch module."""
    B = x.shape[0]
    tb, bp = _choose_tile(B)

    # Batch on lanes, features (padded to 16) on sublanes.  Under jit this
    # pad + transpose fuses into the same dispatch as the kernel.
    xt = jnp.zeros((F_PAD, bp), jnp.float32).at[:F_IN, :B].set(x.T.astype(jnp.float32))

    out = pl.pallas_call(
        mlp_kernel,
        out_shape=jax.ShapeDtypeStruct((1, bp), jnp.float32),
        grid=(bp // tb,),
        in_specs=[
            pl.BlockSpec((F_PAD, tb), lambda i: (0, i)),                # batch-tiled input
            pl.BlockSpec((SLAB_ROWS, SLAB_COLS), lambda i: (0, 0)),     # weights stay resident
        ],
        out_specs=pl.BlockSpec((1, tb), lambda i: (0, i)),              # lane-dense output
        compiler_params=pltpu.CompilerParams(
            dimension_semantics=("parallel",),                          # megacore split on v7x
        ),
    )(xt, slab)

    return out[:, :B].T                                                 # (B, 1)


def init_params(key):
    """PyTorch Linear default init: U(-1/sqrt(fan_in), 1/sqrt(fan_in)); W:(out,in), b:(out,)."""
    def linear_init(key, fan_in, fan_out):
        kw, kb = jax.random.split(key)
        bound = 1.0 / jnp.sqrt(float(fan_in))
        w = jax.random.uniform(kw, (fan_out, fan_in), jnp.float32, -bound, bound)
        b = jax.random.uniform(kb, (fan_out,), jnp.float32, -bound, bound)
        return w, b

    k1, k2, k3 = jax.random.split(key, 3)
    w1, b1 = linear_init(k1, 10, 16)
    w2, b2 = linear_init(k2, 16, 16)
    w3, b3 = linear_init(k3, 16, 1)
    return (w1, b1, w2, b2, w3, b3)


def reference_forward(x, params):
    """Plain-JAX reference (torch layout: y = x @ W.T + b)."""
    w1, b1, w2, b2, w3, b3 = params
    h1 = jnp.maximum(x @ w1.T + b1, 0.0)
    h2 = jnp.maximum(h1 @ w2.T + b2, 0.0)
    return jax.nn.sigmoid(h2 @ w3.T + b3)


if __name__ == "__main__":
    key = jax.random.PRNGKey(0)
    kp, kx = jax.random.split(key)

    params = init_params(kp)
    slab = pack_params(params)          # packed once, reused across forward calls

    # Small batch (single grid step), matches the module's typical usage.
    x = jax.random.normal(kx, (8, 10), jnp.float32)
    out = jax.block_until_ready(sequential_nn_forward(x, slab))
    ref = reference_forward(x, params)
    assert out.shape == (8, 1)
    assert jnp.allclose(out, ref, atol=1e-5), "mismatch vs reference (B=8)"

    # Larger batch: exercises the multi-step 'parallel' grid (2 tiles of 256).
    x_big = jax.random.normal(jax.random.PRNGKey(1), (300, 10), jnp.float32)
    out_big = jax.block_until_ready(sequential_nn_forward(x_big, slab))
    ref_big = reference_forward(x_big, params)
    assert out_big.shape == (300, 1)
    assert jnp.allclose(out_big, ref_big, atol=1e-5), "mismatch vs reference (B=300)"

    print("KERNEL_OK")
</pallas_src>

<mosaic_0001>
module attributes {stable_mosaic.version = 11 : i64} {
  func.func @mlp_kernel(%arg0: i32, %arg1: memref<16x128xf32, #tpu.memory_space<vmem>>, %arg2: memref<40x17xf32, #tpu.memory_space<vmem>>, %arg3: memref<1x128xf32, #tpu.memory_space<vmem>>) attributes {dimension_semantics = [#tpu.dimension_semantics<parallel>], iteration_bounds = array<i64: 1>, scalar_prefetch = 0 : i64, scratch_operands = 0 : i64, tpu.core_type = #tpu.core_type<tc>, window_params = [{transform_indices = @transform_0, window_bounds = array<i64: 16, 128>}, {pipeline_mode = #tpu.pipeline_mode<synchronous>, transform_indices = @transform_1, window_bounds = array<i64: 40, 17>}, {transform_indices = @transform_2, window_bounds = array<i64: 1, 128>}]} {
    %c0 = arith.constant 0 : index
    %c0_0 = arith.constant 0 : index
    %0 = vector.load %arg1[%c0, %c0_0] : memref<16x128xf32, #tpu.memory_space<vmem>>, vector<16x128xf32>
    %c0_1 = arith.constant 0 : index
    %c0_2 = arith.constant 0 : index
    %1 = vector.load %arg2[%c0_1, %c0_2] : memref<40x17xf32, #tpu.memory_space<vmem>>, vector<40x17xf32>
    %2 = vector.extract_strided_slice %1 {offsets = [0, 0], sizes = [16, 16], strides = [1, 1]} : vector<40x17xf32> to vector<16x16xf32>
    %3 = vector.extract_strided_slice %1 {offsets = [0, 16], sizes = [16, 1], strides = [1, 1]} : vector<40x17xf32> to vector<16x1xf32>
    %4 = vector.extract_strided_slice %1 {offsets = [16, 0], sizes = [16, 16], strides = [1, 1]} : vector<40x17xf32> to vector<16x16xf32>
    %5 = vector.extract_strided_slice %1 {offsets = [16, 16], sizes = [16, 1], strides = [1, 1]} : vector<40x17xf32> to vector<16x1xf32>
    %6 = vector.extract_strided_slice %1 {offsets = [32, 0], sizes = [1, 16], strides = [1, 1]} : vector<40x17xf32> to vector<1x16xf32>
    %7 = vector.extract_strided_slice %1 {offsets = [32, 16], sizes = [1, 1], strides = [1, 1]} : vector<40x17xf32> to vector<1x1xf32>
    %cst = arith.constant dense<0.000000e+00> : vector<16x128xf32>
    %8 = tpu.matmul %2, %0, %cst {dimension_numbers = #tpu.dot_dimension_numbers<[1], [0], [0], [1], [0, 0, 1, 1], [], []>} : vector<16x16xf32>, vector<16x128xf32>, vector<16x128xf32> -> vector<16x128xf32>
    %9 = vector.broadcast %3 : vector<16x1xf32> to vector<16x128xf32>
    %10 = arith.addf %8, %9 : vector<16x128xf32>
    %cst_3 = arith.constant 0.000000e+00 : f32
    %11 = vector.broadcast %cst_3 : f32 to vector<16x128xf32>
    %12 = arith.maximumf %10, %11 : vector<16x128xf32>
    %cst_4 = arith.constant dense<0.000000e+00> : vector<16x128xf32>
    %13 = tpu.matmul %4, %12, %cst_4 {dimension_numbers = #tpu.dot_dimension_numbers<[1], [0], [0], [1], [0, 0, 1, 1], [], []>} : vector<16x16xf32>, vector<16x128xf32>, vector<16x128xf32> -> vector<16x128xf32>
    %14 = vector.broadcast %5 : vector<16x1xf32> to vector<16x128xf32>
    %15 = arith.addf %13, %14 : vector<16x128xf32>
    %cst_5 = arith.constant 0.000000e+00 : f32
    %16 = vector.broadcast %cst_5 : f32 to vector<16x128xf32>
    %17 = arith.maximumf %15, %16 : vector<16x128xf32>
    %cst_6 = arith.constant dense<0.000000e+00> : vector<1x128xf32>
    %18 = tpu.matmul %6, %17, %cst_6 {dimension_numbers = #tpu.dot_dimension_numbers<[1], [0], [0], [1], [0, 0, 1, 1], [], []>} : vector<1x16xf32>, vector<16x128xf32>, vector<1x128xf32> -> vector<1x128xf32>
    %19 = vector.broadcast %7 : vector<1x1xf32> to vector<1x128xf32>
    %20 = arith.addf %18, %19 : vector<1x128xf32>
    %cst_7 = arith.constant 0.000000e+00 : f32
    %21 = vector.broadcast %cst_7 : f32 to vector<1x128xf32>
    %22 = arith.subf %21, %20 : vector<1x128xf32>
    %23 = math.exp %22 : vector<1x128xf32>
    %cst_8 = arith.constant 1.000000e+00 : f32
    %24 = vector.broadcast %cst_8 : f32 to vector<1x128xf32>
    %25 = arith.addf %24, %23 : vector<1x128xf32>
    %26 = tpu.reciprocal %25 {approx = true} : vector<1x128xf32> -> vector<1x128xf32>
    %27 = arith.mulf %25, %26 : vector<1x128xf32>
    %cst_9 = arith.constant 2.000000e+00 : f32
    %28 = vector.broadcast %cst_9 : f32 to vector<1x128xf32>
    %29 = arith.subf %28, %27 : vector<1x128xf32>
    %30 = arith.mulf %26, %29 : vector<1x128xf32>
    %c0_10 = arith.constant 0 : index
    %c0_11 = arith.constant 0 : index
    %31 = vector.load %arg3[%c0_10, %c0_11] : memref<1x128xf32, #tpu.memory_space<vmem>>, vector<1x128xf32>
    tpu.vector_store %arg3[%c0_10, %c0_11], %30 {strides = array<i32>} : memref<1x128xf32, #tpu.memory_space<vmem>>, vector<1x128xf32>,
    return
  }
  func.func @transform_0(%arg0: i32) -> (i32, i32) {
    %c0_i32 = arith.constant 0 : i32
    %c0_i32_0 = arith.constant 0 : i32
    return %c0_i32, %arg0 : i32, i32
  }
  func.func @transform_1(%arg0: i32) -> (i32, i32) {
    %c0_i32 = arith.constant 0 : i32
    %c0_i32_0 = arith.constant 0 : i32
    %c0_i32_1 = arith.constant 0 : i32
    return %c0_i32, %c0_i32_0 : i32, i32
  }
  func.func @transform_2(%arg0: i32) -> (i32, i32) {
    %c0_i32 = arith.constant 0 : i32
    %c0_i32_0 = arith.constant 0 : i32
    return %c0_i32, %arg0 : i32, i32
  }
}

</mosaic_0001>

<bundles_post_ra>
// kernel: sequential_nn_forward.1
= control target key start
LH: loop header
LB: loop body
LE: loop exit
PB: predicated region body
PF: predicated region fallthrough
CT: control target
= control target key end

     0   :  { %vm28_vm0 = vcmask 130048   ;;  %v349_v3 = vmov 16   ;;  %v350_v18 = vmov 0.0|0.0   ;;  %vm351_vm1 = vmmov 0   ;;  %s397_s0 = inlined_call_operand.vmem [shape: f32[16,128], index: 0, kind: input, shape index: {}]   ;;  %s398_s1 = inlined_call_operand.vmem [shape: f32[40,17], index: 1, kind: input, shape index: {}]   ;;  %s399_s2 = inlined_call_operand.vmem [shape: f32[1,128], index: 2, kind: output, shape index: {}]  }
   0x1   :  { %v11_v0 = vld [vmem:[%s397_s0] sm:$0xff]  ;;  %v12_v1 = vld [vmem:[%s397_s0 + $0x8] sm:$0xff]  ;;  %343 = vset.pattern.permute.xlu0 %v349_v3  ;;  %344 = vset.pattern.permute.xlu1 %v349_v3  ;;  %v15_v7 = vld [vmem:[%s398_s1 + $0x10] sm:$0xff]  ;;  %v352_v19 = vmov 0.0  }
   0x2   :  { %v13_v2 = vld [vmem:[%s398_s1] sm:$0xff]  ;;  %v328_v4 = vpack.c.bf16 %v12_v1, %v11_v0  ;;  %v14_v5 = vld [vmem:[%s398_s1 + $0x8] sm:$0xff]  ;;  %318 = vmatprep.mubr.msk.f32.mxu1 %vm28_vm0, %v15_v7  ;;  %112 = vperm.xlu1 %344, %v15_v7   ;;  %v16_v8 = vld [vmem:[%s398_s1 + $0x18] sm:$0xff] }
   0x3   :  { %311 = vmatprep.mubr.msk.f32.mxu0 %vm28_vm0, %v13_v2  ;;  %20 = vperm.xlu0 %343, %v13_v2   ;;  %v17_v6 = vld [vmem:[%s398_s1 + $0x20] sm:$0xff] }
   0x4   :  { %329 = vmatprep.subr.bf16.mxu0 %v328_v4 }
   0x5   :  { %331 = vmatpush3.bf16.msra.mxu0 %v328_v4 }
   0x6   :  { %117 = vperm.xlu1 %344, %v16_v8   ;;  %336 = vmatprep.subr.bf16.mxu0 %v350_v18 }
   0x7   :  { %25 = vperm.xlu0 %343, %v14_v5  }
   0x8   :  { %312 = vmatmul.mubr.msk.f32.vlgmr.msra.gmra.mrb[0].mxu0 %vm28_vm0, %v14_v5 }
   0x9   :  { %325 = vmatprep.mubr.msk.f32.mxu0 %vm351_vm1, %v352_v19 }
   0xb   :  { %203 = vperm.xlu0 %343, %v17_v6  }
  0x81   :  { %v113_v20 = vpop.permute.xlu1 %112 }
  0x82   :  { %v21_v9 = vpop.permute.xlu0 %20 }
  0x85   :  { %v118_v21 = vpop.permute.xlu1 %117 }
  0x86   :  { %v26_v10 = vpop.permute.xlu0 %25 }
  0x8a   :  { %v204_v29 = vpop.permute.xlu0 %203 }
  0xdb   :  { %v313_v11 = vpop.f32.mrb[0].mxu0 }
  0xdc   :  { %v105_v12 = vadd.f32 %v313_v11, %v26_v10  ;;  %v99_v13 = vpop.f32.mrb[1].mxu0 }
  0xdd   :  { %v100_v14 = vadd.f32 %v99_v13, %v21_v9 }
  0xde   :  { %v109_v15 = vmax.f32 %v105_v12, 0.0 }
  0xdf   :  { %v108_v16 = vmax.f32 %v100_v14, 0.0 }
  0xe1   :  { %v332_v17 = vpack.c.bf16 %v109_v15, %v108_v16 }
  0xe3   :  { %333 = vmatprep.subr.bf16.mxu1 %v332_v17 }
  0xe4   :  { %335 = vmatpush3.bf16.msra.mxu1 %v332_v17 }
  0xe7   :  { %319 = vmatmul.mubr.msk.f32.vlgmr.msra.gmra.mrb[0].mxu1 %vm28_vm0, %v16_v8 }
 0x1ba   :  { %v320_v22 = vpop.f32.mrb[0].mxu1 }
 0x1bb   :  { %v196_v23 = vadd.f32 %v320_v22, %v118_v21  ;;  %v190_v24 = vpop.f32.mrb[1].mxu1 }
 0x1bc   :  { %v191_v25 = vadd.f32 %v190_v24, %v113_v20 }
 0x1bd   :  { %v200_v26 = vmax.f32 %v196_v23, 0.0 }
 0x1be   :  { %v199_v27 = vmax.f32 %v191_v25, 0.0 }
 0x1c0   :  { %v337_v28 = vpack.c.bf16 %v200_v26, %v199_v27 }
 0x1c2   :  { %338 = vmatpush3.bf16.msra.mxu0 %v337_v28 }
 0x1c5   :  { %326 = vmatmul.mubr.msk.f32.vlgmr.msra.gmra.mrb[2].mxu0 %vm28_vm0, %v17_v6 }
 0x298   :  { %v274_v30 = vpop.f32.mrb[2].mxu0 }
 0x299   :  { %v275_v31 = vadd.f32 %v274_v30, %v204_v29  ;;  %v327_v32 = vpop.f32.mrb[3].mxu0 }
 0x29b   :  { %v278_v33 = vsub.f32 0.0, %v275_v31 }
 0x29d   :  { %v279_v34 = vmul.f32 1.442695, %v278_v33 }
 0x29f   :  { %345 = vpow2.f32 %v279_v34 }
 0x2a9   :  { %v346_v35 = vpop.eup %345 }
 0x2aa   :  { %v281_v36 = vadd.f32 1.0, %v346_v35 }
 0x2ac   :  { %347 = vrcp.f32 %v281_v36 }
 0x2b6   :  { %v348_v37 = vpop.eup %347 }
 0x2b7   :  { %v283_v38 = vmul.f32 %v348_v37, %v281_v36 }
 0x2b9   :  { %v284_v39 = vsub.f32 2.0, %v283_v38 }
 0x2bb   :  { %v285_v40 = vmul.f32 %v348_v37, %v284_v39 }
 0x2bd   :  { %286 = vst [vmem:[%s399_s2] sm:$0x1] %v285_v40 }

</bundles_post_ra>
